<compile_context>
chip_gen: v7x
topology: tpu7x:2x2x1
jax: 0.10.0
libtpu: 0.0.40
codegen_flags: <defaults>
</compile_context>

<pallas_src>
import functools

import jax
import jax.numpy as jnp
from jax import lax
from jax.experimental import pallas as pl
from jax.experimental.pallas import tpu as pltpu


def _round_up(x: int, m: int) -> int:
    return ((x + m - 1) // m) * m


def _num_tensorcores() -> int:
    """Best-effort TC-per-chip query (v7x has 2); safe fallback to 1."""
    try:
        kind = str(jax.devices()[0].device_kind).lower()
        if "v7" in kind:
            return 2
    except Exception:
        pass
    return 1


# ----------------------------- kernels ------------------------------------ #

def _dense_kernel(x_ref, w_ref, b_ref, o_ref):
    # x:(tm,K)  w:(K,tn)  b:(1,tn)  o:(tm,tn).  Canonical MXU shape.
    # The activation tile is cast to the weight dtype in VMEM (VPU work that
    # hides under the MXU), instead of a wrapper-side HBM round trip.
    y = jnp.dot(x_ref[...].astype(w_ref.dtype), w_ref[...],
                preferred_element_type=jnp.float32)
    y = y + b_ref[...].astype(jnp.float32)
    # Dropout(p=0.0) is identity.
    o_ref[...] = y.astype(o_ref.dtype)


def _dense_residual_kernel(x_ref, w_ref, b_ref, r_ref, o_ref):
    y = jnp.dot(x_ref[...].astype(w_ref.dtype), w_ref[...],
                preferred_element_type=jnp.float32)
    y = y + b_ref[...].astype(jnp.float32) + r_ref[...].astype(jnp.float32)
    o_ref[...] = y.astype(o_ref.dtype)


def _dense_residual_ln_kernel(x_ref, w_ref, b_ref, r_ref, g_ref, bt_ref,
                              o_ref, *, eps):
    # out = LayerNorm(x @ w + b + residual) : the ViTLayer epilogue.
    y = jnp.dot(x_ref[...].astype(w_ref.dtype), w_ref[...],
                preferred_element_type=jnp.float32)
    y = y + b_ref[...].astype(jnp.float32) + r_ref[...].astype(jnp.float32)
    mu = jnp.mean(y, axis=-1, keepdims=True)
    d = y - mu
    var = jnp.mean(d * d, axis=-1, keepdims=True)
    yn = d * lax.rsqrt(var + eps)
    o_ref[...] = (yn * g_ref[...].astype(jnp.float32)
                  + bt_ref[...].astype(jnp.float32)).astype(o_ref.dtype)


# ----------------------------- wrapper ------------------------------------ #

def vit_self_output(hidden_state, weight, bias, residual=None, *,
                    ln_weight=None, ln_bias=None, ln_eps=1e-12,
                    tm: int = 512, tn=None,
                    compute_dtype=None, out_dtype=None):
    """Dropout(Linear(hidden_state)) [+ residual] [-> LayerNorm].

    hidden_state: (B, S, H_in), any float dtype (bf16 end-to-end recommended).
    weight:       (H_out, H_in)  PyTorch nn.Linear layout.
    bias:         (H_out,)
    residual:     optional (B, S, H_out) fused into the epilogue.
    ln_weight/ln_bias: optional (H_out,) -> fuse post-residual LayerNorm.
    compute_dtype: MXU input dtype (e.g. jnp.bfloat16; recommended on
                   v5e/v6e/v7x). Only the weight is cast in the wrapper; the
                   activation tile is cast in-kernel. Accumulation stays f32.
    out_dtype:     output dtype (e.g. jnp.bfloat16 on v6e to halve writeback).
    """
    B, S, H_in = hidden_state.shape
    H_out, H_in_w = weight.shape
    assert H_in_w == H_in, "weight/input hidden size mismatch"
    if out_dtype is None:
        out_dtype = hidden_state.dtype

    M = B * S
    x2d = hidden_state.reshape(M, H_in)            # free reshape, no pad/cast

    # One-time weight prep (amortized / const-folded under jit).
    w = weight.T                                   # (H_in, H_out)
    if compute_dtype is not None:
        w = w.astype(compute_dtype)
    b2d = bias.astype(jnp.float32).reshape(1, H_out)

    fuse_ln = ln_weight is not None
    if fuse_ln:
        assert residual is not None, "LayerNorm fusion follows the residual add"
        assert ln_bias is not None

    # Row tile: one full-M block if it fits, else a big 8-aligned tile; the
    # ragged last block is handled by Pallas (no wrapper padding/slicing).
    if M <= tm:
        tm_eff = M
    else:
        tm_eff = _round_up(tm, 8)

    # Column tile: default = full H_out (weight fully VMEM-resident, ideal for
    # ViT-B/L). On a 2-TC chip split H_out evenly across cores when lane-dense,
    # unless the LayerNorm epilogue (needs full rows) is fused.
    if tn is not None:
        assert H_out % tn == 0 and tn % 128 == 0, "tn must be lane-dense"
        tn_eff = tn
    else:
        tn_eff = H_out
        ntc = _num_tensorcores()
        if (not fuse_ln) and ntc > 1 and H_out % (128 * ntc) == 0:
            tn_eff = H_out // ntc
    if fuse_ln:
        assert tn_eff == H_out, "fused LayerNorm needs full output rows"

    grid = (pl.cdiv(M, tm_eff), H_out // tn_eff)

    inputs = [x2d, w, b2d]
    in_specs = [
        pl.BlockSpec((tm_eff, H_in), lambda i, j: (i, 0)),   # activation rows
        pl.BlockSpec((H_in, tn_eff), lambda i, j: (0, j)),   # weight (pre-T)
        pl.BlockSpec((1, tn_eff), lambda i, j: (0, j)),      # bias slice
    ]
    if residual is not None:
        r2d = residual.reshape(M, H_out)
        inputs.append(r2d)
        in_specs.append(pl.BlockSpec((tm_eff, tn_eff), lambda i, j: (i, j)))
    if fuse_ln:
        inputs.append(ln_weight.astype(jnp.float32).reshape(1, H_out))
        inputs.append(ln_bias.astype(jnp.float32).reshape(1, H_out))
        in_specs.append(pl.BlockSpec((1, tn_eff), lambda i, j: (0, j)))
        in_specs.append(pl.BlockSpec((1, tn_eff), lambda i, j: (0, j)))
        kernel = functools.partial(_dense_residual_ln_kernel, eps=float(ln_eps))
    elif residual is not None:
        kernel = _dense_residual_kernel
    else:
        kernel = _dense_kernel

    # Explicit VMEM budget (each BlockSpec is double-buffered). Floor at 16 MiB
    # so v5e's small default never binds; cap at 48 MiB so v7x (64 MiB physical)
    # keeps headroom for Mosaic internal scratch.
    est = 2 * (tm_eff * H_in * jnp.dtype(x2d.dtype).itemsize
               + H_in * tn_eff * jnp.dtype(w.dtype).itemsize
               + tm_eff * tn_eff * jnp.dtype(out_dtype).itemsize)
    if residual is not None:
        est += 2 * tm_eff * tn_eff * jnp.dtype(inputs[3].dtype).itemsize
    vmem_limit = int(min(max(est * 5 // 4, 16 * 1024 * 1024),
                         48 * 1024 * 1024))

    out2d = pl.pallas_call(
        kernel,
        out_shape=jax.ShapeDtypeStruct((M, H_out), out_dtype),
        grid_spec=pltpu.PrefetchScalarGridSpec(
            num_scalar_prefetch=0,
            grid=grid,
            in_specs=in_specs,
            out_specs=pl.BlockSpec((tm_eff, tn_eff), lambda i, j: (i, j)),
        ),
        compiler_params=pltpu.CompilerParams(
            dimension_semantics=("parallel", "parallel"),
            vmem_limit_bytes=vmem_limit),
    )(*inputs)

    return out2d.reshape(B, S, H_out)


# ------------------------------- tests ------------------------------------ #

if __name__ == "__main__":
    # Small, ViT-consistent shapes: batch=2, seq=8 tokens, hidden=32.
    batch, seq, hidden = 2, 8, 32

    key = jax.random.PRNGKey(0)
    k_x, k_w, k_b, k_r, k_g, k_bt = jax.random.split(key, 6)

    x = jax.random.normal(k_x, (batch, seq, hidden), dtype=jnp.float32)
    weight = 0.02 * jax.random.normal(k_w, (hidden, hidden), dtype=jnp.float32)
    bias = 0.02 * jax.random.normal(k_b, (hidden,), dtype=jnp.float32)
    residual = jax.random.normal(k_r, (batch, seq, hidden), dtype=jnp.float32)
    ln_w = 1.0 + 0.1 * jax.random.normal(k_g, (hidden,), dtype=jnp.float32)
    ln_b = 0.1 * jax.random.normal(k_bt, (hidden,), dtype=jnp.float32)

    # Reference (nn.Linear + Dropout(0.0)).
    ref = (x.reshape(-1, hidden) @ weight.T + bias).reshape(batch, seq, hidden)

    # 1) f32 path, no residual.
    out = jax.block_until_ready(vit_self_output(x, weight, bias))
    assert jnp.allclose(out, ref, atol=1e-5, rtol=1e-5), "f32 mismatch"

    # 2) f32 path with fused residual add (ViTLayer epilogue fusion).
    out_r = jax.block_until_ready(vit_self_output(x, weight, bias, residual))
    assert jnp.allclose(out_r, ref + residual, atol=1e-5, rtol=1e-5), \
        "fused-residual mismatch"

    # 3) bf16 compute path (weight cast once in wrapper, x cast in-kernel).
    out_bf = jax.block_until_ready(
        vit_self_output(x, weight, bias, compute_dtype=jnp.bfloat16))
    assert jnp.allclose(out_bf, ref, atol=2e-2, rtol=2e-2), "bf16 mismatch"

    # 4) Ragged row count (like seq=197): M=10, single full-M block.
    seq2 = 5
    x2 = jax.random.normal(k_x, (batch, seq2, hidden), dtype=jnp.float32)
    ref2 = (x2.reshape(-1, hidden) @ weight.T + bias).reshape(batch, seq2, hidden)
    out2 = jax.block_until_ready(vit_self_output(x2, weight, bias))
    assert jnp.allclose(out2, ref2, atol=1e-5, rtol=1e-5), "ragged-M mismatch"

    # 5) True ragged LAST block (M=10, tm=8 -> grid_i=2, 2-row valid tail):
    # verifies the no-pad / masked-tail-store path.
    out3 = jax.block_until_ready(vit_self_output(x2, weight, bias, tm=8))
    assert jnp.allclose(out3, ref2, atol=1e-5, rtol=1e-5), "ragged-tail mismatch"

    # 6) Fused residual + post-residual LayerNorm (layernorm_after in ViTLayer).
    y = ref + residual
    mu = y.mean(-1, keepdims=True)
    var = ((y - mu) ** 2).mean(-1, keepdims=True)
    ln_ref = (y - mu) / jnp.sqrt(var + 1e-12) * ln_w + ln_b
    out_ln = jax.block_until_ready(
        vit_self_output(x, weight, bias, residual,
                        ln_weight=ln_w, ln_bias=ln_b, ln_eps=1e-12))
    assert jnp.allclose(out_ln, ln_ref, atol=1e-4, rtol=1e-4), \
        "fused-layernorm mismatch"

    print("KERNEL_OK")
</pallas_src>

<mosaic_0001>
module attributes {stable_mosaic.version = 11 : i64} {
  func.func @_dense_kernel(%arg0: i32, %arg1: i32, %arg2: memref<16x32xf32, #tpu.memory_space<vmem>>, %arg3: memref<32x32xf32, #tpu.memory_space<vmem>>, %arg4: memref<1x32xf32, #tpu.memory_space<vmem>>, %arg5: memref<16x32xf32, #tpu.memory_space<vmem>>) attributes {dimension_semantics = [#tpu.dimension_semantics<parallel>, #tpu.dimension_semantics<parallel>], iteration_bounds = array<i64: 1, 1>, scalar_prefetch = 0 : i64, scratch_operands = 0 : i64, tpu.core_type = #tpu.core_type<tc>, window_params = [{transform_indices = @transform_0, window_bounds = array<i64: 16, 32>}, {transform_indices = @transform_1, window_bounds = array<i64: 32, 32>}, {transform_indices = @transform_2, window_bounds = array<i64: 1, 32>}, {transform_indices = @transform_3, window_bounds = array<i64: 16, 32>}]} {
    %c0 = arith.constant 0 : index
    %c0_0 = arith.constant 0 : index
    %0 = vector.load %arg2[%c0, %c0_0] : memref<16x32xf32, #tpu.memory_space<vmem>>, vector<16x32xf32>
    %c0_1 = arith.constant 0 : index
    %c0_2 = arith.constant 0 : index
    %1 = vector.load %arg3[%c0_1, %c0_2] : memref<32x32xf32, #tpu.memory_space<vmem>>, vector<32x32xf32>
    %cst = arith.constant dense<0.000000e+00> : vector<16x32xf32>
    %2 = tpu.matmul %0, %1, %cst {dimension_numbers = #tpu.dot_dimension_numbers<[1], [0], [0], [1], [0, 0, 1, 1], [], []>} : vector<16x32xf32>, vector<32x32xf32>, vector<16x32xf32> -> vector<16x32xf32>
    %c0_3 = arith.constant 0 : index
    %c0_4 = arith.constant 0 : index
    %3 = vector.load %arg4[%c0_3, %c0_4] : memref<1x32xf32, #tpu.memory_space<vmem>>, vector<1x32xf32>
    %4 = vector.broadcast %3 : vector<1x32xf32> to vector<16x32xf32>
    %5 = arith.addf %2, %4 : vector<16x32xf32>
    %c0_5 = arith.constant 0 : index
    %c0_6 = arith.constant 0 : index
    %6 = vector.load %arg5[%c0_5, %c0_6] : memref<16x32xf32, #tpu.memory_space<vmem>>, vector<16x32xf32>
    tpu.vector_store %arg5[%c0_5, %c0_6], %5 {strides = array<i32>} : memref<16x32xf32, #tpu.memory_space<vmem>>, vector<16x32xf32>,
    return
  }
  func.func @transform_0(%arg0: i32, %arg1: i32) -> (i32, i32) {
    %c0_i32 = arith.constant 0 : i32
    %c0_i32_0 = arith.constant 0 : i32
    return %arg0, %c0_i32 : i32, i32
  }
  func.func @transform_1(%arg0: i32, %arg1: i32) -> (i32, i32) {
    %c0_i32 = arith.constant 0 : i32
    %c0_i32_0 = arith.constant 0 : i32
    return %c0_i32, %arg1 : i32, i32
  }
  func.func @transform_2(%arg0: i32, %arg1: i32) -> (i32, i32) {
    %c0_i32 = arith.constant 0 : i32
    %c0_i32_0 = arith.constant 0 : i32
    return %c0_i32, %arg1 : i32, i32
  }
  func.func @transform_3(%arg0: i32, %arg1: i32) -> (i32, i32) {
    %c0_i32 = arith.constant 0 : i32
    return %arg0, %arg1 : i32, i32
  }
}

</mosaic_0001>

<bundles_post_ra>
// kernel: tpu_custom_call.1
= control target key start
LH: loop header
LB: loop body
LE: loop exit
PB: predicated region body
PF: predicated region fallthrough
CT: control target
= control target key end

     0   :  { %8 = vsyncpa [#allocation3], 0  ;;  %s340_s0 = inlined_call_operand.hbm [shape: f32[16,32], index: 0, kind: input, shape index: {}]   ;;  %s341_s1 = inlined_call_operand.hbm [shape: f32[32,32], index: 1, kind: input, shape index: {}]   ;;  %s342_s2 = inlined_call_operand.vmem [shape: f32[1,32], index: 2, kind: input, shape index: {}]   ;;  %s343_s3 = inlined_call_operand.hbm [shape: f32[16,32], index: 3, kind: output, shape index: {}]  }
   0x1   :  { %9 = vsyncpa [#allocation6], 0 }
   0x2   :  { %10 = vsyncpa [#allocation4], 0  ;;  %s263_s12 = smov [#allocation2]   ;;  %s191_s16 = scalar_lea.hbm %s340_s0, 256 }
   0x3   :  { %s16_s13 = sshll.u32 %s263_s12, 4  ;;  %p192_p0 = scmp.ne.s32.totalorder %s340_s0, %s191_s16  ;;  %s17_s13 = int_to_ptr.vmem [resolvable:$true] %s16_s13 }
   0x4   :  { %p195_p1 = scmp.lt.u32.totalorder %s191_s16, %s340_s0 }
   0x6   :  { %p197_p2 = pnand %p195_p1, %p192_p0 }
   0x8   :  { %200 = shalt.err (!%p197_p2)
}
   0x9   :  { %s201_s21 = scalar_lea.vmem %s17_s13, 256  ;;  %p206_p4 = scmp.lt.s32.totalorder %s17_s13, %s17_s13 }
   0xa   :  { %p202_p3 = scmp.ne.s32.totalorder %s17_s13, %s201_s21  ;;  %p207_p5 = scmp.lt.s32.totalorder %s201_s21, %s201_s21 }
   0xc   :  { %p208_p6 = por %p207_p5, %p206_p4 }
   0xe   :  { %p209_p7 = pnand %p208_p6, %p202_p3 }
  0x10   :  { %212 = shalt.err (!%p209_p7)
}
  0x11   :  { %s264_s22 = smov 128   ;;  %s265_s23 = smov 8  }
  0x12   :  { %22 = dma.hbm_to_vmem [thread:$0]  %s340_s0, 256, %s17_s13, [#allocation3], %s264_s22, %s264_s22, %s265_s23  }
  0x13   :  { %s266_s26 = smov [#allocation5]   ;;  %s213_s30 = scalar_lea.hbm %s341_s1, 512 }
  0x14   :  { %s28_s27 = sshll.u32 %s266_s26, 4  ;;  %p214_p8 = scmp.ne.s32.totalorder %s341_s1, %s213_s30  ;;  %s29_s27 = int_to_ptr.vmem [resolvable:$true] %s28_s27 }
  0x15   :  { %p217_p9 = scmp.lt.u32.totalorder %s213_s30, %s341_s1 }
  0x17   :  { %p219_p10 = pnand %p217_p9, %p214_p8 }
  0x19   :  { %222 = shalt.err (!%p219_p10)
}
  0x1a   :  { %s223_s8 = scalar_lea.vmem %s29_s27, 512  ;;  %p228_p12 = scmp.lt.s32.totalorder %s29_s27, %s29_s27 }
  0x1b   :  { %p224_p11 = scmp.ne.s32.totalorder %s29_s27, %s223_s8  ;;  %p229_p13 = scmp.lt.s32.totalorder %s223_s8, %s223_s8 }
  0x1d   :  { %p230_p0 = por %p229_p13, %p228_p12 }
  0x1f   :  { %p231_p1 = pnand %p230_p0, %p224_p11 }
  0x21   :  { %234 = shalt.err (!%p231_p1)
}
  0x22   :  { %34 = dma.hbm_to_vmem [thread:$0]  %s341_s1, 512, %s29_s27, [#allocation6], %s264_s22, %s264_s22, %s265_s23  }
  0x23   :  { %257 = dma.done.wait [#allocation3], 256  }
  0x24   :  { %258 = vsyncadd [#allocation3], 4294967040 }
  0x25   :  { %259 = dma.done.wait [#allocation6], 512  }
  0x26   :  { %260 = vsyncadd [#allocation6], 4294966784  ;;  %vm56_vm0 = vcmask 261120   ;;  %v45_v0 = vld [vmem:[#allocation5] sm:$0xff]  ;;  %v46_v1 = vld [vmem:[#allocation5 + $0x8] sm:$0xff]  ;;  %s267_s11 = smov [#allocation7]  }
  0x27   :  { %v47_v2 = vld [vmem:[#allocation5 + $0x10] sm:$0xff]  ;;  %v178_v3 = vpack.c.bf16 %v46_v1, %v45_v0  ;;  %v48_v4 = vld [vmem:[#allocation5 + $0x18] sm:$0xff]  ;;  %s145_s12 = sshll.u32 %s267_s11, 4  ;;  %s146_s12 = int_to_ptr.vmem [resolvable:$true] %s145_s12 }
  0x28   :  { %v43_v5 = vld [vmem:[#allocation2] sm:$0xff]  ;;  %v182_v6 = vpack.c.bf16 %v48_v4, %v47_v2  ;;  %v44_v7 = vld [vmem:[#allocation2 + $0x8] sm:$0xff]  ;;  %s235_s13 = scalar_lea.vmem %s146_s12, 256  ;;  %p240_p3 = scmp.lt.s32.totalorder %s146_s12, %s146_s12 }
  0x29   :  { %175 = vmatprep.mubr.msk.f32.mxu0 %vm56_vm0, %v43_v5  ;;  %179 = vmatprep.subr.bf16.mxu0 %v178_v3  ;;  %v158_v8 = vld [vmem:[%s342_s2] ss:$0 sm:$0xff]  ;;  %p236_p2 = scmp.ne.s32.totalorder %s146_s12, %s235_s13  ;;  %p241_p4 = scmp.lt.s32.totalorder %s235_s13, %s235_s13 }
  0x2a   :  { %181 = vmatpush3.bf16.msra.mxu0 %v178_v3 }
  0x2b   :  { %183 = vmatprep.subr.bf16.mxu0 %v182_v6  ;;  %p242_p5 = por %p241_p4, %p240_p3 }
  0x2d   :  { %p243_p6 = pnand %p242_p5, %p236_p2 }
  0x2e   :  { %185 = vmatpush3.bf16.msra.mxu0 %v182_v6 }
  0x31   :  { %176 = vmatmul.mubr.msk.f32.vlgmr.msra.gmra.mrb[0].mxu0 %vm56_vm0, %v44_v7 }
 0x104   :  { %v177_v9 = vpop.f32.mrb[0].mxu0 }
 0x105   :  { %v135_v10 = vadd.f32 %v177_v9, %v158_v8  ;;  %v129_v11 = vpop.f32.mrb[1].mxu0 }
 0x106   :  { %v130_v12 = vadd.f32 %v158_v8, %v129_v11 }
 0x107   :  { %139 = vst.msk [vmem:[#allocation7 + $0x8] sm:$0xff] %vm56_vm0, %v135_v10 }
 0x108   :  { %138 = vst.msk [vmem:[#allocation7] sm:$0xff] %vm56_vm0, %v130_v12 }
 0x109   :  { %246 = shalt.err (!%p243_p6)
}
 0x10a   :  { %s247_s15 = scalar_lea.hbm %s343_s3, 256 }
 0x10b   :  { %p248_p7 = scmp.ne.s32.totalorder %s343_s3, %s247_s15  ;;  %p251_p8 = scmp.lt.u32.totalorder %s247_s15, %s343_s3 }
 0x10d   :  { %p253_p9 = pnand %p251_p8, %p248_p7 }
 0x10f   :  { %256 = shalt.err (!%p253_p9)
}
 0x110   :  { %151 = dma.vmem_to_hbm [thread:$0]  %s146_s12, 256, %s343_s3, [#allocation4], %s264_s22, %s264_s22, %s265_s23  }
 0x111   :  { %261 = dma.done.wait [#allocation4], 256  }
 0x112   :  { %262 = vsyncadd [#allocation4], 4294967040 }
 0x113   :  { %155 = vsyncpa [#allocation3], 1 }
 0x114   :  { %156 = vsyncpa [#allocation6], 1 }
 0x115   :  { %157 = vsyncpa [#allocation4], 1 }

</bundles_post_ra>
